<compile_context>
chip_gen: v7x
topology: tpu7x:2x2x1
jax: 0.10.0
libtpu: 0.0.40
codegen_flags: <defaults>
</compile_context>

<pallas_src>
import functools

import numpy as np
import jax
import jax.numpy as jnp
from jax import lax
from jax.experimental import pallas as pl
from jax.experimental.pallas import tpu as pltpu


def _upsample_conv_kernel(x_ref, halo_ref, g_ref, r_ref, bias_ref, o_ref, *,
                          C, Cout, TH, W):
    """One (batch n, row-tile t) grid step.

    x_ref    : (1, C, TH, W)          bf16  body input rows [t*TH, (t+1)*TH)
    halo_ref : (1, 1, 2C, W)          bf16  rows t*TH-1 (first C) and (t+1)*TH (last C),
                                            already zeroed at the image edges
    g_ref    : (W, 3*2W)              bf16  fused "nearest x2 + width tap" selection
    r_ref    : (3, Cout*2TH, C*TH+2C) bf16  per-width-tap row taps + channel fold
    bias_ref : (Cout*2TH, 1)          f32   bias per fused output row
    o_ref    : (1, Cout, 2TH, 2W)     f32   output rows [2*t*TH, 2*(t+1)*TH)
    """
    Wo = 2 * W
    # body rows, channel-stacked: (C, TH, W) -> (C*TH, W) is a layout no-op (TH%8==0)
    xb = x_ref[0].reshape(C * TH, W)
    xh = halo_ref[0, 0]                                   # (2C, W)
    xall = jnp.concatenate([xb, xh], axis=0)              # (C*TH + 2C, W)

    # column stage: nearest-x2 column selection for all 3 width taps, one matmul
    u = jnp.dot(xall, g_ref[...], preferred_element_type=jnp.float32)
    u = u.astype(jnp.bfloat16)   # exact: entries are copies of bf16 x values (or 0)

    # row stage: row taps + channel contraction, fused over Cout (M = Cout*2TH).
    # One accumulating matmul per width tap keeps u resident in registers and
    # avoids relayouting the tap axis from lanes to sublanes.
    acc = jnp.dot(r_ref[0], u[:, 0 * Wo:1 * Wo], preferred_element_type=jnp.float32)
    acc += jnp.dot(r_ref[1], u[:, 1 * Wo:2 * Wo], preferred_element_type=jnp.float32)
    acc += jnp.dot(r_ref[2], u[:, 2 * Wo:3 * Wo], preferred_element_type=jnp.float32)

    acc += bias_ref[...]                                  # VPU broadcast add (lanes)
    o_ref[0] = acc.reshape(Cout, 2 * TH, Wo).astype(o_ref.dtype)


def upsample_nearest2x_conv2d(x, weight, bias, *, row_tile=32,
                              compute_dtype=jnp.bfloat16):
    """Fused nearest x2 upsample + Conv2d(k=3, s=1, p=1) in NCHW.

    x: (N, C, H, W); weight: (Cout, C, 3, 3) (PyTorch layout); bias: (Cout,)
    returns: (N, Cout, 2H, 2W) f32

    NOTE: output lane width is 2W; W >= 64 keeps every store unmasked/lane-dense.
    """
    N, C, H, W = x.shape
    Cout, Cin, Kh, Kw = weight.shape
    assert Cin == C and Kh == 3 and Kw == 3
    TH = min(row_tile, H)
    assert TH % 8 == 0 and H % TH == 0, "row_tile must be a multiple of 8 dividing H"
    n_tiles = H // TH
    Wo = 2 * W
    Kall = C * TH + 2 * C      # body rows + (top, bottom) halo rows per channel
    cdt = compute_dtype

    xf = x.astype(jnp.float32)
    weight = weight.astype(jnp.float32)
    bias = bias.astype(jnp.float32)

    # --- pre-gathered halo rows: rows {t*TH - 1, (t+1)*TH}, zero at the image edges
    xp = jnp.pad(xf, ((0, 0), (0, 0), (1, 1), (0, 0)))        # (N, C, H+2, W)
    t_idx = np.arange(n_tiles)
    top = xp[:, :, t_idx * TH, :]                             # row t*TH - 1   (or 0)
    bot = xp[:, :, (t_idx + 1) * TH + 1, :]                   # row (t+1)*TH   (or 0)
    halo = jnp.concatenate([top, bot], axis=1)                # (N, 2C, n_tiles, W)
    halo = jnp.transpose(halo, (0, 2, 1, 3)).astype(cdt)      # (N, n_tiles, 2C, W)

    # --- Gcat (W, 3*Wo): (x_row @ Gcat)[b*Wo + J] = up_row[J + b - 1], 0 outside
    Jv = np.arange(Wo)
    wv = np.arange(W)
    g_blocks = []
    for b in range(3):
        src = Jv + b - 1
        valid = (src >= 0) & (src < Wo)
        col = np.where(valid, src, 0) // 2
        g_blocks.append(((wv[:, None] == col[None, :]) & valid[None, :]).astype(np.float32))
    gcat = jnp.asarray(np.concatenate(g_blocks, axis=1), dtype=cdt)   # (W, 3*Wo)

    # --- Rtap (3, Cout*2TH, Kall): row taps + channel fold, one slab per width tap
    # local output row I reads local source row rl = (I + a - 1)//2 for row-tap a:
    #   0 <= rl < TH -> body row ci*TH + rl ; rl == -1 -> top halo ; rl == TH -> bottom halo
    Iv = np.arange(2 * TH)
    av = np.arange(3)
    rl = (Iv[:, None] + av[None, :] - 1) // 2                         # (2TH, 3) in [-1, TH]
    civ = np.arange(C)[:, None, None]                                 # (C, 1, 1)
    rlb = np.broadcast_to(rl[None], (C, 2 * TH, 3))
    kmap = np.where(rlb < 0, C * TH + civ + 0 * rlb,
                    np.where(rlb >= TH, C * TH + C + civ + 0 * rlb, civ * TH + rlb))
    onehot = (kmap[..., None] == np.arange(Kall)).astype(np.float32)  # (C, 2TH, 3, Kall)
    rtap = jnp.einsum('ocab,ciak->boik', weight, jnp.asarray(onehot))
    rtap = rtap.reshape(3, Cout * 2 * TH, Kall).astype(cdt)

    # bias per row of the fused (Cout*2TH, 2W) row-stage output (kept in f32)
    bias_col = jnp.repeat(bias, 2 * TH).reshape(Cout * 2 * TH, 1)

    kernel = functools.partial(_upsample_conv_kernel, C=C, Cout=Cout, TH=TH, W=W)

    # NOTE(v7x): gcat/rtap/bias_col are grid-invariant; if VMEM gets tight on the
    # 64 MiB parts they can additionally be marked pipeline_mode=pl.Buffered(1).
    return pl.pallas_call(
        kernel,
        out_shape=jax.ShapeDtypeStruct((N, Cout, 2 * H, Wo), jnp.float32),
        grid=(N, n_tiles),
        in_specs=[
            # body input rows of this tile
            pl.BlockSpec((1, C, TH, W), lambda n, t: (n, 0, t, 0)),
            # pre-gathered 2-row-per-channel halo (tiny DMA per step)
            pl.BlockSpec((1, 1, 2 * C, W), lambda n, t: (n, t, 0, 0)),
            # grid-invariant weight-derived operands (DMA'd once, stay resident)
            pl.BlockSpec((W, 3 * Wo), lambda n, t: (0, 0)),
            pl.BlockSpec((3, Cout * 2 * TH, Kall), lambda n, t: (0, 0, 0)),
            pl.BlockSpec((Cout * 2 * TH, 1), lambda n, t: (0, 0)),
        ],
        out_specs=pl.BlockSpec((1, Cout, 2 * TH, Wo), lambda n, t: (n, 0, t, 0)),
        compiler_params=pltpu.CompilerParams(
            dimension_semantics=("parallel", "parallel"),
            vmem_limit_bytes=32 * 1024 * 1024,
        ),
    )(xf.astype(cdt), halo, gcat, rtap, bias_col)


def reference(x, weight, bias):
    """Pure-JAX reference: nearest x2 upsample + Conv2d(k=3, s=1, p=1)."""
    up = jnp.repeat(jnp.repeat(x, 2, axis=2), 2, axis=3)
    y = lax.conv_general_dilated(up, weight, window_strides=(1, 1),
                                 padding=((1, 1), (1, 1)),
                                 dimension_numbers=('NCHW', 'OIHW', 'NCHW'))
    return y + bias[None, :, None, None]


if __name__ == "__main__":
    key = jax.random.PRNGKey(0)
    k1, k2, k3 = jax.random.split(key, 3)

    # Upsample_with_interpolation_and_Conv(in_channels=4, dim=2):
    #   F.interpolate(x, scale_factor=2, mode='nearest') + Conv2d(4, 4, k=3, s=1, p=1)
    N, C, H, W = 2, 4, 16, 16
    x = jax.random.normal(k1, (N, C, H, W), dtype=jnp.float32)
    weight = 0.2 * jax.random.normal(k2, (C, C, 3, 3), dtype=jnp.float32)
    bias = 0.1 * jax.random.normal(k3, (C,), dtype=jnp.float32)

    out = upsample_nearest2x_conv2d(x, weight, bias, row_tile=32)
    out = jax.block_until_ready(out)

    assert out.shape == (N, C, 2 * H, 2 * W)
    ref = reference(x, weight, bias)
    err = float(jnp.max(jnp.abs(out - ref)))
    # bf16 MXU operands -> loosened tolerance vs the f32 reference
    assert jnp.allclose(out, ref, atol=5e-2, rtol=5e-2), err
    print("KERNEL_OK")
</pallas_src>

<mosaic_0001>
module attributes {stable_mosaic.version = 11 : i64} {
  func.func @_upsample_conv_kernel(%arg0: i32, %arg1: i32, %arg2: memref<1x4x16x16xbf16, #tpu.memory_space<vmem>>, %arg3: memref<1x1x8x16xbf16, #tpu.memory_space<vmem>>, %arg4: memref<16x96xbf16, #tpu.memory_space<vmem>>, %arg5: memref<3x128x72xbf16, #tpu.memory_space<vmem>>, %arg6: memref<128x1xf32, #tpu.memory_space<vmem>>, %arg7: memref<1x4x32x32xf32, #tpu.memory_space<vmem>>) attributes {dimension_semantics = [#tpu.dimension_semantics<parallel>, #tpu.dimension_semantics<parallel>], iteration_bounds = array<i64: 2, 1>, scalar_prefetch = 0 : i64, scratch_operands = 0 : i64, tpu.core_type = #tpu.core_type<tc>, window_params = [{transform_indices = @transform_0, window_bounds = array<i64: 1, 4, 16, 16>}, {transform_indices = @transform_1, window_bounds = array<i64: 1, 1, 8, 16>}, {pipeline_mode = #tpu.pipeline_mode<synchronous>, transform_indices = @transform_2, window_bounds = array<i64: 16, 96>}, {pipeline_mode = #tpu.pipeline_mode<synchronous>, transform_indices = @transform_3, window_bounds = array<i64: 3, 128, 72>}, {pipeline_mode = #tpu.pipeline_mode<synchronous>, transform_indices = @transform_4, window_bounds = array<i64: 128, 1>}, {transform_indices = @transform_5, window_bounds = array<i64: 1, 4, 32, 32>}]} {
    %c0 = arith.constant 0 : index
    %c0_0 = arith.constant 0 : index
    %c0_1 = arith.constant 0 : index
    %c0_2 = arith.constant 0 : index
    %0 = vector.load %arg2[%c0, %c0_0, %c0_1, %c0_2] : memref<1x4x16x16xbf16, #tpu.memory_space<vmem>>, vector<1x4x16x16xbf16>
    %1 = vector.shape_cast %0 : vector<1x4x16x16xbf16> to vector<4x16x16xbf16>
    %2 = vector.shape_cast %1 : vector<4x16x16xbf16> to vector<64x16xbf16>
    %c0_3 = arith.constant 0 : index
    %c0_4 = arith.constant 0 : index
    %c0_5 = arith.constant 0 : index
    %c0_6 = arith.constant 0 : index
    %3 = vector.load %arg3[%c0_3, %c0_4, %c0_5, %c0_6] : memref<1x1x8x16xbf16, #tpu.memory_space<vmem>>, vector<1x1x8x16xbf16>
    %4 = vector.shape_cast %3 : vector<1x1x8x16xbf16> to vector<8x16xbf16>
    %5 = tpu.concatenate %2, %4 in 0 : vector<64x16xbf16>, vector<8x16xbf16> -> vector<72x16xbf16>
    %c0_7 = arith.constant 0 : index
    %c0_8 = arith.constant 0 : index
    %6 = vector.load %arg4[%c0_7, %c0_8] : memref<16x96xbf16, #tpu.memory_space<vmem>>, vector<16x96xbf16>
    %cst = arith.constant dense<0.000000e+00> : vector<72x96xf32>
    %7 = tpu.matmul %5, %6, %cst {dimension_numbers = #tpu.dot_dimension_numbers<[1], [0], [0], [1], [0, 0, 1, 1], [], []>} : vector<72x16xbf16>, vector<16x96xbf16>, vector<72x96xf32> -> vector<72x96xf32>
    %8 = arith.truncf %7 : vector<72x96xf32> to vector<72x96xbf16>
    %c0_9 = arith.constant 0 : index
    %c0_10 = arith.constant 0 : index
    %c0_11 = arith.constant 0 : index
    %9 = vector.load %arg5[%c0_9, %c0_10, %c0_11] : memref<3x128x72xbf16, #tpu.memory_space<vmem>>, vector<1x128x72xbf16>
    %10 = vector.shape_cast %9 : vector<1x128x72xbf16> to vector<128x72xbf16>
    %11 = vector.extract_strided_slice %8 {offsets = [0, 0], sizes = [72, 32], strides = [1, 1]} : vector<72x96xbf16> to vector<72x32xbf16>
    %cst_12 = arith.constant dense<0.000000e+00> : vector<128x32xf32>
    %12 = tpu.matmul %10, %11, %cst_12 {dimension_numbers = #tpu.dot_dimension_numbers<[1], [0], [0], [1], [0, 0, 1, 1], [], []>} : vector<128x72xbf16>, vector<72x32xbf16>, vector<128x32xf32> -> vector<128x32xf32>
    %c1 = arith.constant 1 : index
    %c0_13 = arith.constant 0 : index
    %c0_14 = arith.constant 0 : index
    %13 = vector.load %arg5[%c1, %c0_13, %c0_14] : memref<3x128x72xbf16, #tpu.memory_space<vmem>>, vector<1x128x72xbf16>
    %14 = vector.shape_cast %13 : vector<1x128x72xbf16> to vector<128x72xbf16>
    %15 = vector.extract_strided_slice %8 {offsets = [0, 32], sizes = [72, 32], strides = [1, 1]} : vector<72x96xbf16> to vector<72x32xbf16>
    %cst_15 = arith.constant dense<0.000000e+00> : vector<128x32xf32>
    %16 = tpu.matmul %14, %15, %cst_15 {dimension_numbers = #tpu.dot_dimension_numbers<[1], [0], [0], [1], [0, 0, 1, 1], [], []>} : vector<128x72xbf16>, vector<72x32xbf16>, vector<128x32xf32> -> vector<128x32xf32>
    %17 = arith.addf %12, %16 : vector<128x32xf32>
    %c2 = arith.constant 2 : index
    %c0_16 = arith.constant 0 : index
    %c0_17 = arith.constant 0 : index
    %18 = vector.load %arg5[%c2, %c0_16, %c0_17] : memref<3x128x72xbf16, #tpu.memory_space<vmem>>, vector<1x128x72xbf16>
    %19 = vector.shape_cast %18 : vector<1x128x72xbf16> to vector<128x72xbf16>
    %20 = vector.extract_strided_slice %8 {offsets = [0, 64], sizes = [72, 32], strides = [1, 1]} : vector<72x96xbf16> to vector<72x32xbf16>
    %cst_18 = arith.constant dense<0.000000e+00> : vector<128x32xf32>
    %21 = tpu.matmul %19, %20, %cst_18 {dimension_numbers = #tpu.dot_dimension_numbers<[1], [0], [0], [1], [0, 0, 1, 1], [], []>} : vector<128x72xbf16>, vector<72x32xbf16>, vector<128x32xf32> -> vector<128x32xf32>
    %22 = arith.addf %17, %21 : vector<128x32xf32>
    %c0_19 = arith.constant 0 : index
    %c0_20 = arith.constant 0 : index
    %23 = vector.load %arg6[%c0_19, %c0_20] : memref<128x1xf32, #tpu.memory_space<vmem>>, vector<128x1xf32>
    %24 = vector.broadcast %23 : vector<128x1xf32> to vector<128x32xf32>
    %25 = arith.addf %22, %24 : vector<128x32xf32>
    %26 = vector.shape_cast %25 : vector<128x32xf32> to vector<4x32x32xf32>
    %c0_21 = arith.constant 0 : index
    %c0_22 = arith.constant 0 : index
    %c0_23 = arith.constant 0 : index
    %c0_24 = arith.constant 0 : index
    %27 = vector.load %arg7[%c0_21, %c0_22, %c0_23, %c0_24] : memref<1x4x32x32xf32, #tpu.memory_space<vmem>>, vector<1x4x32x32xf32>
    %28 = vector.shape_cast %27 : vector<1x4x32x32xf32> to vector<4x32x32xf32>
    %29 = vector.shape_cast %26 : vector<4x32x32xf32> to vector<1x4x32x32xf32>
    tpu.vector_store %arg7[%c0_21, %c0_22, %c0_23, %c0_24], %29 {strides = array<i32>} : memref<1x4x32x32xf32, #tpu.memory_space<vmem>>, vector<1x4x32x32xf32>,
    return
  }
  func.func @transform_0(%arg0: i32, %arg1: i32) -> (i32, i32, i32, i32) {
    %c0_i32 = arith.constant 0 : i32
    %c0_i32_0 = arith.constant 0 : i32
    %c0_i32_1 = arith.constant 0 : i32
    return %arg0, %c0_i32, %arg1, %c0_i32_0 : i32, i32, i32, i32
  }
  func.func @transform_1(%arg0: i32, %arg1: i32) -> (i32, i32, i32, i32) {
    %c0_i32 = arith.constant 0 : i32
    %c0_i32_0 = arith.constant 0 : i32
    %c0_i32_1 = arith.constant 0 : i32
    return %arg0, %arg1, %c0_i32, %c0_i32_0 : i32, i32, i32, i32
  }
  func.func @transform_2(%arg0: i32, %arg1: i32) -> (i32, i32) {
    %c0_i32 = arith.constant 0 : i32
    %c0_i32_0 = arith.constant 0 : i32
    %c0_i32_1 = arith.constant 0 : i32
    return %c0_i32, %c0_i32_0 : i32, i32
  }
  func.func @transform_3(%arg0: i32, %arg1: i32) -> (i32, i32, i32) {
    %c0_i32 = arith.constant 0 : i32
    %c0_i32_0 = arith.constant 0 : i32
    %c0_i32_1 = arith.constant 0 : i32
    %c0_i32_2 = arith.constant 0 : i32
    return %c0_i32, %c0_i32_0, %c0_i32_1 : i32, i32, i32
  }
  func.func @transform_4(%arg0: i32, %arg1: i32) -> (i32, i32) {
    %c0_i32 = arith.constant 0 : i32
    %c0_i32_0 = arith.constant 0 : i32
    %c0_i32_1 = arith.constant 0 : i32
    return %c0_i32, %c0_i32_0 : i32, i32
  }
  func.func @transform_5(%arg0: i32, %arg1: i32) -> (i32, i32, i32, i32) {
    %c0_i32 = arith.constant 0 : i32
    %c0_i32_0 = arith.constant 0 : i32
    %c0_i32_1 = arith.constant 0 : i32
    return %arg0, %c0_i32, %arg1, %c0_i32_0 : i32, i32, i32, i32
  }
}

</mosaic_0001>

<bundles_post_ra>
// kernel: tpu_custom_call.1
= control target key start
LH: loop header
LB: loop body
LE: loop exit
PB: predicated region body
PF: predicated region fallthrough
CT: control target
= control target key end

     0   :  { %10 = vsyncpa [#allocation3], 0  ;;  %s2072_s0 = inlined_call_operand.vmem [shape: bf16[2,4,16,16], index: 0, kind: input, shape index: {}]   ;;  %s2073_s1 = inlined_call_operand.vmem [shape: bf16[2,1,8,16], index: 1, kind: input, shape index: {}]   ;;  %s2074_s2 = inlined_call_operand.vmem [shape: bf16[16,96], index: 2, kind: input, shape index: {}]   ;;  %s2075_s3 = inlined_call_operand.vmem [shape: bf16[3,128,72], index: 3, kind: input, shape index: {}]   ;;  %s2076_s4 = inlined_call_operand.vmem [shape: f32[128,1], index: 4, kind: input, shape index: {}]   ;;  %s2077_s5 = inlined_call_operand.hbm [shape: f32[2,4,32,32], index: 5, kind: output, shape index: {}]  }
   0x1   :  { %12 = vsyncpa [#allocation3 + $0x1], 0  ;;  %s1742_s18 = smov 0   ;;  %s1744_s19 = smov 0  }
   0x2   :  { %s1746_s20 = smov 0   ;;  %s1748_s21 = smov 0  }
   0x3   :  { %s1750_s22 = smov 0   ;;  %s1752_s23 = smov 0  }
   0x4 LB: > { %s1245_s24 = sadd.s32 4294967295, %s1702_s23   ;;  %s1246_s25 = sadd.s32 4294967294, %s1702_s23   ;;  %s1702_s23 = sphi %s1752_s23, %s18_s23   ;;  %s1698_s22 = sphi %s1750_s22, %s2084_s22   ;;  %s1694_s21 = sphi %s1748_s21, %s2083_s21   ;;  %s1690_s20 = sphi %s1746_s20, %s2082_s20   ;;  %s1686_s19 = sphi %s1744_s19, %s2081_s19   ;;  %s1682_s18 = sphi %s1742_s18, %s2080_s18  }
   0x5   : > { %s30_s26 = sadd.s32 1, %s1698_s22  ;;  %s158_s27 = sadd.s32 1, %s1690_s20 }
   0x6   : > { %p32_p0 = scmp.ge.s32.totalorder %s30_s26, 2  ;;  %p168_p1 = scmp.ne.s32.totalorder %s1690_s20, %s1686_s19 }
   0x7   : > { %p169_p2 = scmp.eq.s32.totalorder %s1245_s24, 1  ;;  %p174_p3 = scmp.ne.s32.totalorder %s1686_s19, %s1682_s18 }
   0x8   : > { %s2086_s26 = smov (%p32_p0, %s30_s26), 0  ;;  %p175_p5 = scmp.eq.s32.totalorder %s1246_s25, 1 }
   0x9   : > { %p1782_p4 = por %p169_p2, %p168_p1  ;;  %s153_s29 = ssub.s32 %s1698_s22, %s2086_s26 }
   0xa   : > { %p1249_p6 = scmp.ge.s32.totalorder %s1702_s23, 1  ;;  %p156_p7 = scmp.eq.s32.totalorder %s153_s29, 0 }
   0xb   : > { %p1789_p8 = por %p175_p5, %p174_p3  ;;  %p225_p9 = scmp.lt.s32.totalorder %s1702_s23, 3 }
   0xc   : > { %s1795_s6 = scalar_select %p156_p7, %s1690_s20, %s158_s27  }
   0xd   : > { %p226_p10 = pnand %p1249_p6, %p225_p9 }
   0xe   : > { %v1595_v0 = vld [vmem:[%s2074_s2] sm:$0xff] (!%p226_p10)   ;;  %v1704_v1 = vmov (!%p226_p10), 0.0   ;;  %p265_p11 = scmp.lt.s32.totalorder (!%p226_p10), %s1694_s21, 1  ;;  %vm1705_vm0 = vmmov (!%p226_p10), 0   ;;  %vm320_vm1 = vcmask (!%p226_p10), 130048   ;;  %vm505_vm2 = vcmask (!%p226_p10), 588800  }
   0xf   : > { %229 = sbr.rel (%p226_p10) target bundleno = 650 (0x28a), region = 40  ;;  %1396 = vmatprep.subr.bf16.mxu0 (!%p226_p10), %v1704_v1  ;;  %1398 = vmatprep.mubr.msk.bf16.mxu0 (!%p226_p10), %vm1705_vm0, %v1704_v1  ;;  %v1600_v7 = vld [vmem:[%s2075_s3] sm:$0xff] (!%p226_p10)   ;;  %s1706_s27 = smov (!%p226_p10), 96   ;;  %vm530_vm3 = vcmask (!%p226_p10), 1043456   ;;  %v1601_v35 = vld [vmem:[%s2075_s3 + $0x8] sm:$0xff] (!%p226_p10)   ;;  %v1602_v36 = vld [vmem:[%s2075_s3 + $0x10] sm:$0xff] (!%p226_p10)  }
  0x10   : > { %1397 = vmatpush3.bf16.msra.mxu0 (!%p226_p10), %v1595_v0  ;;  %1454 = vmatprep.mubr.msk.bf16.mxu1 (!%p226_p10), %vm505_vm2, %v1600_v7  ;;  %s1707_s29 = smov (!%p226_p10), 64   ;;  %v1608_v23 = vld [vmem:[%s2075_s3 + $0x40] sm:$0xff] (!%p226_p10)   ;;  %v1603_v37 = vld [vmem:[%s2075_s3 + $0x18] sm:$0xff] (!%p226_p10)   ;;  %v1007_v39 = vld [vmem:[%s2076_s4 + $0x8] sm:$0xff] (!%p226_p10)  ;;  %v1708_v41 = vmov (!%p226_p10), 0   ;;  %vm1118_vm4 = vcmask (!%p226_p10), 261120  }
  0x11   : > { %v1604_v38 = vld [vmem:[%s2075_s3 + $0x20] sm:$0xff] (!%p226_p10)   ;;  %1594 = vset.pattern.permute.xlu1 (!%p226_p10), %v1708_v41  ;;  %1593 = vset.pattern.permute.xlu0 (!%p226_p10), %v1708_v41  ;;  %v1605_v42 = vld [vmem:[%s2075_s3 + $0x28] sm:$0xff] (!%p226_p10)   ;;  %v1606_v43 = vld [vmem:[%s2075_s3 + $0x30] sm:$0xff] (!%p226_p10)   ;;  %s1709_s25 = smov (!%p226_p10), [#allocation2]  }
  0x12   : > { %v1006_v40 = vld [vmem:[%s2076_s4] sm:$0xff] (!%p226_p10)  ;;  %v1008_v44 = vld [vmem:[%s2076_s4 + $0x10] sm:$0xff] (!%p226_p10)  ;;  %v1009_v45 = vld [vmem:[%s2076_s4 + $0x18] sm:$0xff] (!%p226_p10) }
  0x13   : > { %v1010_v46 = vld [vmem:[%s2076_s4 + $0x20] sm:$0xff] (!%p226_p10)  ;;  %v1011_v47 = vld [vmem:[%s2076_s4 + $0x28] sm:$0xff] (!%p226_p10)  ;;  %v1607_v48 = vld [vmem:[%s2075_s3 + $0x38] sm:$0xff] (!%p226_p10)  }
  0x14   : > { %v1609_v49 = vld [vmem:[%s2075_s3 + $0x80] sm:$0xff] (!%p226_p10)   ;;  %v1012_v50 = vld [vmem:[%s2076_s4 + $0x30] sm:$0xff] (!%p226_p10)  ;;  %v1013_v51 = vld [vmem:[%s2076_s4 + $0x38] sm:$0xff] (!%p226_p10) }
  0x15   : > { %v1014_v52 = vld [vmem:[%s2076_s4 + $0x40] sm:$0xff] (!%p226_p10)  ;;  %v1015_v53 = vld [vmem:[%s2076_s4 + $0x48] sm:$0xff] (!%p226_p10)  ;;  %v1016_v54 = vld [vmem:[%s2076_s4 + $0x50] sm:$0xff] (!%p226_p10) }
  0x16   : > { %s266_s9 = scalar_select %p265_p11, %s1694_s21, 1  ;;  %v1017_v55 = vld [vmem:[%s2076_s4 + $0x58] sm:$0xff]  ;;  %v1018_v56 = vld [vmem:[%s2076_s4 + $0x60] sm:$0xff]  ;;  %v1019_v57 = vld [vmem:[%s2076_s4 + $0x68] sm:$0xff] }
  0x17   : > { %v1020_v58 = vld [vmem:[%s2076_s4 + $0x70] sm:$0xff]  ;;  %v1021_v59 = vld [vmem:[%s2076_s4 + $0x78] sm:$0xff] }
  0x18   : > { %s1349_s10 = sshll.u32 %s266_s9, 5  ;;  %s1253_s14 = sshll.u32 %s266_s9, 2 }
  0x19   : > { %s272_s13 = scalar_lea.vmem %s2072_s0, %s1349_s10  ;;  %s280_s17 = scalar_lea.vmem %s2073_s1, %s1253_s14 }
  0x1a   : > { %v1596_v2 = vld [vmem:[%s272_s13] sm:$0xff]   ;;  %v1597_v3 = vld [vmem:[%s272_s13 + $0x8] sm:$0xff]   ;;  %v1598_v4 = vld [vmem:[%s272_s13 + $0x10] sm:$0xff]   ;;  %s261_s10 = sand.u32 1, %s1686_s19  }
  0x1b   : > { %1399 = vmatmul.mubr.msk.bf16.vlgmr.msra.gmra.mrb[0].mxu0 %vm320_vm1, %v1596_v2  ;;  %v1599_v5 = vld [vmem:[%s272_s13 + $0x18] sm:$0xff]   ;;  %v291_v6 = vld [vmem:[%s280_s17] sm:$0xf]  ;;  %s1250_s11 = sshll.u32 %s261_s10, 7  ;;  %s1350_s13 = sshll.u32 %s1694_s21, 11 }
  0x1c   : > { %1402 = vmatprep.mubr.msk.bf16.mxu0 %vm1705_vm0, %v1704_v1  ;;  %s1981_s12 = scalar_lea.vmem [#allocation2], %s1250_s11  ;;  %s2014_s17 = scalar_lea.hbm %s2077_s5, %s1350_s13 }
  0x1d   : > { %s1151_s14 = sshll.u32 %s1981_s12, 4  ;;  %s2026_s21 = scalar_lea.sflag [#allocation3], %s261_s10  ;;  %s2016_s14 = int_to_ptr.vmem [resolvable:$true] %s1151_s14 }
  0x1e   : > { %s1624_s24 = scalar_lea.vmem %s2016_s14, 2048 }
  0x1f   : > { %p1625_p12 = scmp.ne.s32.totalorder %s2016_s14, %s1624_s24 }
  0x21   : > { %p1626_p13 = pnand %p1625_p12, %p1782_p4 }
  0x23   : > { %1403 = vmatmul.mubr.msk.bf16.gmra.mrb[4].mxu0 %vm320_vm1, %v1597_v3  ;;  %p1627_p0 = pneg %p1626_p13 }
  0x24   : > { %1406 = vmatprep.mubr.msk.bf16.mxu0 %vm1705_vm0, %v1704_v1 }
  0x2b   : > { %1407 = vmatmul.mubr.msk.bf16.gmra.mrb[8].mxu0 %vm320_vm1, %v1598_v4 }
  0x2c   : > { %1410 = vmatprep.mubr.msk.bf16.mxu0 %vm1705_vm0, %v1704_v1 }
  0x33   : > { %1411 = vmatmul.mubr.msk.bf16.gmra.mrb[12].mxu0 %vm320_vm1, %v1599_v5 }
  0x34   : > { %1414 = vmatprep.mubr.msk.bf16.mxu0 %vm1705_vm0, %v1704_v1 }
  0x3b   : > { %1415 = vmatmul.mubr.msk.bf16.gmra.mrb[16].mxu0 %vm320_vm1, %v291_v6 }
  0x3c   : > { %1428 = vmatprep.mubr.msk.bf16.mxu0 %vm505_vm2, %v1608_v23 }
  0xee   : > { %v370_v8 = vpop.f32.mrb[0].mxu0 }
  0xef   : > { %v1400_v9 = vpop.f32.mrb[1].mxu0 }
  0xf0   : > { %v373_v10 = vpop.f32.mrb[2].mxu0  ;;  %v1611_v9 = vld [vmem:[%s2075_s3 + $0x88] sm:$0xff]  }
  0xf1   : > { %v408_v11 = vpack.c.bf16 %v373_v10, %v370_v8  ;;  %v1401_v12 = vpop.f32.mrb[3].mxu0  ;;  %v1610_v8 = vld [vmem:[%s2075_s3 + $0x48] sm:$0xff]   ;;  %v1612_v10 = vld [vmem:[%s2075_s3 + $0x50] sm:$0xff]  }
  0xf2   : > { %v1614_v12 = vld [vmem:[%s2075_s3 + $0x58] sm:$0xff]  }
  0xf3   : > { %491 = vrot.lane.b32.xlu0 %v408_v11, %s1706_s27  ;;  %1444 = vmatprep.subr.bf16.mxu1 %v408_v11 }
  0xf4   : > { %1445 = vmatpush3.bf16.msra.mxu1 %v408_v11 }
  0xf6   : > { %v378_v13 = vpop.f32.mrb[4].mxu0 }
  0xf7   : > { %852 = vrot.lane.b32.xlu0 %v408_v11, %s1707_s29  ;;  %v1404_v14 = vpop.f32.mrb[5].mxu0  ;;  %v1613_v11 = vld [vmem:[%s2075_s3 + $0x90] sm:$0xff]  }
  0xf8   : > { %v381_v15 = vpop.f32.mrb[6].mxu0  ;;  %v1616_v14 = vld [vmem:[%s2075_s3 + $0x60] sm:$0xff]  }
  0xf9   : > { %v409_v16 = vpack.c.bf16 %v381_v15, %v378_v13  ;;  %v1405_v17 = vpop.f32.mrb[7].mxu0  ;;  %v1615_v13 = vld [vmem:[%s2075_s3 + $0x98] sm:$0xff]   ;;  %v1617_v15 = vld [vmem:[%s2075_s3 + $0xa0] sm:$0xff]  }
  0xfa   : > { %v1619_v17 = vld [vmem:[%s2075_s3 + $0xa8] sm:$0xff]  }
  0xfb   : > { %493 = vrot.lane.b32.xlu1 %v409_v16, %s1706_s27  ;;  %1446 = vmatprep.subr.bf16.mxu1 %v409_v16 }
  0xfc   : > { %1447 = vmatpush3.bf16.msra.mxu1 %v409_v16 }
  0xfe   : > { %v386_v18 = vpop.f32.mrb[8].mxu0 }
  0xff   : > { %854 = vrot.lane.b32.xlu1 %v409_v16, %s1707_s29  ;;  %v1408_v19 = vpop.f32.mrb[9].mxu0  ;;  %v1618_v16 = vld [vmem:[%s2075_s3 + $0x68] sm:$0xff]  }
 0x100   : > { %v389_v20 = vpop.f32.mrb[10].mxu0  ;;  %v1621_v19 = vld [vmem:[%s2075_s3 + $0xb0] sm:$0xff]  }
 0x101   : > { %v410_v21 = vpack.c.bf16 %v389_v20, %v386_v18  ;;  %v1409_v22 = vpop.f32.mrb[11].mxu0  ;;  %v1620_v18 = vld [vmem:[%s2075_s3 + $0x70] sm:$0xff]   ;;  %v1622_v20 = vld [vmem:[%s2075_s3 + $0x78] sm:$0xff]  }
 0x103   : > { %856 = vrot.lane.b32.xlu1 %v410_v21, %s1707_s29  ;;  %495 = vrot.lane.b32.xlu0 %v410_v21, %s1706_s27 }
 0x104   : > { %1448 = vmatprep.subr.bf16.mxu1 %v410_v21 }
 0x105   : > { %1449 = vmatpush3.bf16.msra.mxu1 %v410_v21  ;;  %v1623_v21 = vld [vmem:[%s2075_s3 + $0xb8] sm:$0xff]  }
 0x106   : > { %v394_v24 = vpop.f32.mrb[12].mxu0 }
 0x107   : > { %v1412_v25 = vpop.f32.mrb[13].mxu0 }
 0x108   : > { %v397_v26 = vpop.f32.mrb[14].mxu0 }
 0x109   : > { %v411_v27 = vpack.c.bf16 %v397_v26, %v394_v24  ;;  %v1413_v28 = vpop.f32.mrb[15].mxu0 }
 0x10b   : > { %858 = vrot.lane.b32.xlu1 %v411_v27, %s1707_s29  ;;  %497 = vrot.lane.b32.xlu0 %v411_v27, %s1706_s27 }
 0x10c   : > { %1450 = vmatprep.subr.bf16.mxu1 %v411_v27 }
 0x10d   : > { %1451 = vmatpush3.bf16.msra.mxu1 %v411_v27 }
 0x10e   : > { %v402_v29 = vpop.f32.mrb[16].mxu0 }
 0x10f   : > { %v412_v30 = vpack.c.bf16 %v402_v29, %v402_v29  ;;  %v1416_v31 = vpop.f32.mrb[17].mxu0 }
 0x110   : > { %v405_v32 = vpop.f32.mrb[18].mxu0 }
 0x111   : > { %860 = vrot.lane.b32.xlu1 %v412_v30, %s1707_s29  ;;  %499 = vrot.lane.b32.xlu0 %v412_v30, %s1706_s27  ;;  %v1417_v33 = vpop.f32.mrb[19].mxu0  ;;  %v696_v34 = vsel %vm530_vm3, %v412_v30, 0  ;;  %s1628_s27 = sshll.u32 %s1709_s25, 4  ;;  %s1629_s27 = int_to_ptr.vmem [resolvable:$false] %s1628_s27 }
 0x112   : > { %1529 = vmatprep.subr.msk.bf16.mxu1 %vm530_vm3, %v412_v30  ;;  %s1630_s29 = scalar_lea.vmem %s1629_s27, 4096  ;;  %p1631_p1 = scmp.lt.s32.totalorder %s2016_s14, %s1629_s27 }
 0x113   : > { %1453 = vmatpush3.bf16.msra.mxu1 %v696_v34  ;;  %p1632_p2 = scmp.lt.s32.totalorder %s1630_s29, %s1624_s24 }
 0x115   : > { %1029 = vperm.xlu1 %1594, %v1007_v39   ;;  %1024 = vperm.xlu0 %1593, %v1006_v40   ;;  %p1633_p3 = por %p1632_p2, %p1631_p1 }
 0x116   : > { %1455 = vmatmul.mubr.msk.bf16.vlgmr.msra.gmra.mrb[0].mxu1 %vm505_vm2, %v1601_v35 }
 0x117   : > { %1458 = vmatprep.mubr.msk.bf16.mxu1 %vm505_vm2, %v1602_v36  ;;  %p1634_p5 = pnand %p1633_p3, %p1627_p0 }
 0x119   : > { %1034 = vperm.xlu1 %1594, %v1008_v44   ;;  %1039 = vperm.xlu0 %1593, %v1009_v45  }
 0x11d   : > { %1044 = vperm.xlu1 %1594, %v1010_v46   ;;  %1049 = vperm.xlu0 %1593, %v1011_v47  }
 0x11e   : > { %1459 = vmatmul.mubr.msk.bf16.gmra.mrb[4].mxu1 %vm505_vm2, %v1603_v37 }
 0x11f   : > { %1462 = vmatprep.mubr.msk.bf16.mxu1 %vm505_vm2, %v1604_v38 }
 0x121   : > { %1054 = vperm.xlu1 %1594, %v1012_v50   ;;  %1059 = vperm.xlu0 %1593, %v1013_v51  }
 0x125   : > { %1064 = vperm.xlu1 %1594, %v1014_v52   ;;  %1069 = vperm.xlu0 %1593, %v1015_v53  }
 0x126   : > { %1463 = vmatmul.mubr.msk.bf16.gmra.mrb[8].mxu1 %vm505_vm2, %v1605_v42 }
 0x127   : > { %1466 = vmatprep.mubr.msk.bf16.mxu1 %vm505_vm2, %v1606_v43 }
 0x129   : > { %1074 = vperm.xlu1 %1594, %v1016_v54   ;;  %1079 = vperm.xlu0 %1593, %v1017_v55  }
 0x12d   : > { %1084 = vperm.xlu1 %1594, %v1018_v56   ;;  %1089 = vperm.xlu0 %1593, %v1019_v57  }
 0x12e   : > { %1467 = vmatmul.mubr.msk.bf16.gmra.mrb[12].mxu1 %vm505_vm2, %v1607_v48 }
 0x12f   : > { %1480 = vmatprep.mubr.msk.bf16.mxu1 %vm505_vm2, %v1609_v49 }
 0x131   : > { %1094 = vperm.xlu1 %1594, %v1020_v58   ;;  %1099 = vperm.xlu0 %1593, %v1021_v59  }
 0x165   : > { %v492_v60 = vpop.permute.xlu0 %491 }
 0x166   : > { %1418 = vmatprep.subr.bf16.mxu0 %v492_v60 }
 0x167   : > { %1419 = vmatpush3.bf16.msra.mxu0 %v492_v60 }
 0x169   : > { %v853_v61 = vpop.permute.xlu0 %852 }
 0x16a   : > { %1470 = vmatprep.subr.bf16.mxu1 %v853_v61 }
 0x16b   : > { %1471 = vmatpush3.bf16.msra.mxu1 %v853_v61 }
 0x16d   : > { %v494_v62 = vpop.permute.xlu1 %493 }
 0x16e   : > { %1420 = vmatprep.subr.bf16.mxu0 %v494_v62 }
 0x16f   : > { %1421 = vmatpush3.bf16.msra.mxu0 %v494_v62 }
 0x171   : > { %v855_v63 = vpop.permute.xlu1 %854 }
 0x172   : > { %1472 = vmatprep.subr.bf16.mxu1 %v855_v63 }
 0x173   : > { %1473 = vmatpush3.bf16.msra.mxu1 %v855_v63 }
 0x175   : > { %v857_v0 = vpop.permute.xlu1 %856  ;;  %v496_v1 = vpop.permute.xlu0 %495 }
 0x176   : > { %1422 = vmatprep.subr.bf16.mxu0 %v496_v1  ;;  %1474 = vmatprep.subr.bf16.mxu1 %v857_v0 }
 0x177   : > { %1423 = vmatpush3.bf16.msra.mxu0 %v496_v1  ;;  %1475 = vmatpush3.bf16.msra.mxu1 %v857_v0 }
 0x17d   : > { %v859_v2 = vpop.permute.xlu1 %858  ;;  %v498_v3 = vpop.permute.xlu0 %497 }
 0x17e   : > { %1424 = vmatprep.subr.bf16.mxu0 %v498_v3  ;;  %1476 = vmatprep.subr.bf16.mxu1 %v859_v2 }
 0x17f   : > { %1425 = vmatpush3.bf16.msra.mxu0 %v498_v3  ;;  %1477 = vmatpush3.bf16.msra.mxu1 %v859_v2 }
 0x183   : > { %v861_v4 = vpop.permute.xlu1 %860  ;;  %v500_v5 = vpop.permute.xlu0 %499 }
 0x184   : > { %v891_v6 = vsel %vm530_vm3, %v861_v4, 0  ;;  %v532_v7 = vsel %vm530_vm3, %v500_v5, 0  ;;  %1528 = vmatprep.subr.msk.bf16.mxu0 %vm530_vm3, %v500_v5  ;;  %1530 = vmatprep.subr.msk.bf16.mxu1 %vm530_vm3, %v861_v4 }
 0x185   : > { %1427 = vmatpush3.bf16.msra.mxu0 %v532_v7  ;;  %1479 = vmatpush3.bf16.msra.mxu1 %v891_v6 }
 0x188   : > { %1429 = vmatmul.mubr.msk.bf16.vlgmr.msra.gmra.mrb[20].mxu0 %vm505_vm2, %v1610_v8  ;;  %1481 = vmatmul.mubr.msk.bf16.vlgmr.msra.gmra.mrb[0].mxu1 %vm505_vm2, %v1611_v9 }
 0x189   : > { %1432 = vmatprep.mubr.msk.bf16.mxu0 %vm505_vm2, %v1612_v10  ;;  %1484 = vmatprep.mubr.msk.bf16.mxu1 %vm505_vm2, %v1613_v11 }
 0x190   : > { %1433 = vmatmul.mubr.msk.bf16.gmra.mrb[24].mxu0 %vm505_vm2, %v1614_v12  ;;  %1485 = vmatmul.mubr.msk.bf16.gmra.mrb[4].mxu1 %vm505_vm2, %v1615_v13 }
 0x191   : > { %1436 = vmatprep.mubr.msk.bf16.mxu0 %vm505_vm2, %v1616_v14  ;;  %1488 = vmatprep.mubr.msk.bf16.mxu1 %vm505_vm2, %v1617_v15 }
 0x194   : > { %v1030_v22 = vpop.permute.xlu1 %1029  ;;  %v1025_v23 = vpop.permute.xlu0 %1024 }
 0x198   : > { %1437 = vmatmul.mubr.msk.bf16.gmra.mrb[28].mxu0 %vm505_vm2, %v1618_v16  ;;  %1489 = vmatmul.mubr.msk.bf16.gmra.mrb[8].mxu1 %vm505_vm2, %v1619_v17  ;;  %v1035_v24 = vpop.permute.xlu1 %1034  ;;  %v1040_v25 = vpop.permute.xlu0 %1039 }
 0x199   : > { %1440 = vmatprep.mubr.msk.bf16.mxu0 %vm505_vm2, %v1620_v18  ;;  %1492 = vmatprep.mubr.msk.bf16.mxu1 %vm505_vm2, %v1621_v19 }
 0x19c   : > { %v1045_v26 = vpop.permute.xlu1 %1044  ;;  %v1050_v27 = vpop.permute.xlu0 %1049 }
 0x1a0   : > { %1441 = vmatmul.mubr.msk.bf16.gmra.mrb[32].mxu0 %vm505_vm2, %v1622_v20  ;;  %1493 = vmatmul.mubr.msk.bf16.gmra.mrb[12].mxu1 %vm505_vm2, %v1623_v21  ;;  %v1055_v28 = vpop.permute.xlu1 %1054  ;;  %v1060_v29 = vpop.permute.xlu0 %1059 }
 0x1a4   : > { %v1065_v30 = vpop.permute.xlu1 %1064  ;;  %v1070_v47 = vpop.permute.xlu0 %1069 }
 0x1a8   : > { %v1075_v48 = vpop.permute.xlu1 %1074  ;;  %v1080_v1 = vpop.permute.xlu0 %1079 }
 0x1ac   : > { %v1085_v2 = vpop.permute.xlu1 %1084  ;;  %v1090_v18 = vpop.permute.xlu0 %1089 }
 0x1b0   : > { %v1095_v20 = vpop.permute.xlu1 %1094 }
 0x25b   : > { %v1430_v31 = vpop.f32.mrb[20].mxu0  ;;  %v1482_v32 = vpop.f32.mrb[0].mxu1 }
 0x25c   : > { %v1496_v33 = vadd.f32 %v1482_v32, %v1430_v31  ;;  %v568_v34 = vpop.f32.mrb[21].mxu0  ;;  %v927_v35 = vpop.f32.mrb[1].mxu1 }
 0x25d   : > { %v1497_v36 = vadd.f32 %v927_v35, %v568_v34  ;;  %v1431_v37 = vpop.f32.mrb[22].mxu0  ;;  %v1483_v38 = vpop.f32.mrb[2].mxu1 }
 0x25e   : > { %v1104_v39 = vadd.f32 %v1496_v33, %v1035_v24  ;;  %v1498_v40 = vadd.f32 %v1483_v38, %v1431_v37  ;;  %v571_v41 = vpop.f32.mrb[23].mxu0  ;;  %v930_v42 = vpop.f32.mrb[3].mxu1 }
 0x25f   : > { %v1102_v43 = vadd.f32 %v1497_v36, %v1025_v23  ;;  %v1499_v44 = vadd.f32 %v930_v42, %v571_v41  ;;  %v1100_v33 = vpop.permute.xlu0 %1099 }
 0x260   : > { %1121 = vst.msk [vmem:[%s1981_s12 + $0x10] sm:$0xff] %vm1118_vm4, %v1104_v39  ;;  %v1105_v45 = vadd.f32 %v1498_v40, %v1040_v25 }
 0x261   : > { %1119 = vst.msk [vmem:[%s1981_s12] sm:$0xff] %vm1118_vm4, %v1102_v43  ;;  %v1103_v46 = vadd.f32 %v1499_v44, %v1030_v22 }
 0x262   : > { %1122 = vst.msk [vmem:[%s1981_s12 + $0x18] sm:$0xff] %vm1118_vm4, %v1105_v45 }
 0x263   : > { %1120 = vst.msk [vmem:[%s1981_s12 + $0x8] sm:$0xff] %vm1118_vm4, %v1103_v46  ;;  %v1434_v49 = vpop.f32.mrb[24].mxu0  ;;  %v1486_v50 = vpop.f32.mrb[4].mxu1 }
 0x264   : > { %v1500_v51 = vadd.f32 %v1486_v50, %v1434_v49  ;;  %v584_v52 = vpop.f32.mrb[25].mxu0  ;;  %v943_v53 = vpop.f32.mrb[5].mxu1 }
 0x265   : > { %v1501_v54 = vadd.f32 %v943_v53, %v584_v52  ;;  %v1435_v55 = vpop.f32.mrb[26].mxu0  ;;  %v1487_v56 = vpop.f32.mrb[6].mxu1 }
 0x266   : > { %v1108_v57 = vadd.f32 %v1500_v51, %v1055_v28  ;;  %v1502_v58 = vadd.f32 %v1487_v56, %v1435_v55  ;;  %v587_v59 = vpop.f32.mrb[27].mxu0  ;;  %v946_v60 = vpop.f32.mrb[7].mxu1 }
 0x267   : > { %v1106_v61 = vadd.f32 %v1501_v54, %v1045_v26  ;;  %v1503_v62 = vadd.f32 %v946_v60, %v587_v59 }
 0x268   : > { %1125 = vst.msk [vmem:[%s1981_s12 + $0x30] sm:$0xff] %vm1118_vm4, %v1108_v57  ;;  %v1109_v63 = vadd.f32 %v1502_v58, %v1060_v29 }
 0x269   : > { %1123 = vst.msk [vmem:[%s1981_s12 + $0x20] sm:$0xff] %vm1118_vm4, %v1106_v61  ;;  %v1107_v0 = vadd.f32 %v1503_v62, %v1050_v27 }
 0x26a   : > { %1126 = vst.msk [vmem:[%s1981_s12 + $0x38] sm:$0xff] %vm1118_vm4, %v1109_v63 }
 0x26b   : > { %1124 = vst.msk [vmem:[%s1981_s12 + $0x28] sm:$0xff] %vm1118_vm4, %v1107_v0  ;;  %v1438_v3 = vpop.f32.mrb[28].mxu0  ;;  %v1490_v4 = vpop.f32.mrb[8].mxu1 }
 0x26c   : > { %v1504_v5 = vadd.f32 %v1490_v4, %v1438_v3  ;;  %v600_v6 = vpop.f32.mrb[29].mxu0  ;;  %v959_v7 = vpop.f32.mrb[9].mxu1 }
 0x26d   : > { %v1505_v8 = vadd.f32 %v959_v7, %v600_v6  ;;  %v1439_v9 = vpop.f32.mrb[30].mxu0  ;;  %v1491_v10 = vpop.f32.mrb[10].mxu1 }
 0x26e   : > { %v1112_v11 = vadd.f32 %v1504_v5, %v1075_v48  ;;  %v1506_v12 = vadd.f32 %v1491_v10, %v1439_v9  ;;  %v603_v13 = vpop.f32.mrb[31].mxu0  ;;  %v962_v14 = vpop.f32.mrb[11].mxu1 }
 0x26f   : > { %v1110_v15 = vadd.f32 %v1505_v8, %v1065_v30  ;;  %v1507_v16 = vadd.f32 %v962_v14, %v603_v13 }
 0x270   : > { %1129 = vst.msk [vmem:[%s1981_s12 + $0x50] sm:$0xff] %vm1118_vm4, %v1112_v11  ;;  %v1113_v17 = vadd.f32 %v1506_v12, %v1080_v1 }
 0x271   : > { %1127 = vst.msk [vmem:[%s1981_s12 + $0x40] sm:$0xff] %vm1118_vm4, %v1110_v15  ;;  %v1111_v19 = vadd.f32 %v1507_v16, %v1070_v47 }
 0x272   : > { %1130 = vst.msk [vmem:[%s1981_s12 + $0x58] sm:$0xff] %vm1118_vm4, %v1113_v17 }
 0x273   : > { %1128 = vst.msk [vmem:[%s1981_s12 + $0x48] sm:$0xff] %vm1118_vm4, %v1111_v19  ;;  %v1442_v21 = vpop.f32.mrb[32].mxu0  ;;  %v1494_v22 = vpop.f32.mrb[12].mxu1 }
 0x274   : > { %v1508_v23 = vadd.f32 %v1494_v22, %v1442_v21  ;;  %v616_v24 = vpop.f32.mrb[33].mxu0  ;;  %v975_v25 = vpop.f32.mrb[13].mxu1 }
 0x275   : > { %v1509_v26 = vadd.f32 %v975_v25, %v616_v24  ;;  %v1443_v27 = vpop.f32.mrb[34].mxu0  ;;  %v1495_v28 = vpop.f32.mrb[14].mxu1 }
 0x276   : > { %v1116_v29 = vadd.f32 %v1508_v23, %v1095_v20  ;;  %v1510_v30 = vadd.f32 %v1495_v28, %v1443_v27  ;;  %v619_v31 = vpop.f32.mrb[35].mxu0  ;;  %v978_v32 = vpop.f32.mrb[15].mxu1 }
 0x277   : > { %v1114_v34 = vadd.f32 %v1509_v26, %v1085_v2  ;;  %v1511_v35 = vadd.f32 %v978_v32, %v619_v31 }
 0x278   : > { %1133 = vst.msk [vmem:[%s1981_s12 + $0x70] sm:$0xff] %vm1118_vm4, %v1116_v29  ;;  %v1117_v36 = vadd.f32 %v1510_v30, %v1100_v33 }
 0x279   : > { %1131 = vst.msk [vmem:[%s1981_s12 + $0x60] sm:$0xff] %vm1118_vm4, %v1114_v34  ;;  %v1115_v37 = vadd.f32 %v1511_v35, %v1090_v18 }
 0x27a   : > { %1134 = vst.msk [vmem:[%s1981_s12 + $0x78] sm:$0xff] %vm1118_vm4, %v1117_v36 }
 0x27b   : > { %1132 = vst.msk [vmem:[%s1981_s12 + $0x68] sm:$0xff] %vm1118_vm4, %v1115_v37 }
 0x27c   : > { %1637 = shalt.err (!%p1634_p5)
}
 0x27d   : > { %s1638_s7 = scalar_lea.hbm %s2014_s17, 2048  ;;  %s1642_s10 = scalar_lea.hbm %s2077_s5, 4096 }
 0x27e   : > { %p1639_p6 = scmp.ne.s32.totalorder %s2014_s17, %s1638_s7  ;;  %p1643_p10 = scmp.lt.u32.totalorder %s2014_s17, %s2077_s5 }
 0x27f   : > { %p1644_p11 = scmp.lt.u32.totalorder %s1642_s10, %s1638_s7  ;;  %p1646_p13 = scmp.lt.u32.totalorder %s1638_s7, %s2014_s17 }
 0x280   : > { %p1640_p7 = pnand %p1639_p6, %p1782_p4 }
 0x281   : > { %p1645_p12 = por %p1644_p11, %p1643_p10 }
 0x282   : > { %p1641_p9 = pneg %p1640_p7 }
 0x283   : > { %p1647_p0 = por %p1646_p13, %p1645_p12 }
 0x285   : > { %p1648_p1 = pnand %p1647_p0, %p1641_p9 }
 0x287   : > { %1651 = shalt.err (!%p1648_p1)
}
 0x288   : > { %s1710_s13 = smov 128   ;;  %s1711_s15 = smov 8  }
 0x289   : > { %1531 = dma.vmem_to_hbm [thread:$0]  (%p1782_p4), %s2016_s14, 2048, %s2014_s17, %s2026_s21, %s1710_s13, %s1710_s13, %s1711_s15  }
 0x28a PF: > { %p1537_p2 = scmp.ge.s32.totalorder %s1702_s23, 2  ;;  %s1166_s16 = sand.u32 1, %s1682_s18  }
 0x28b   : > { %s1167_s24 = scalar_lea.sflag [#allocation3], %s1166_s16 }
 0x28c   : > { %p1534_p3 = pnand %p1537_p2, %p1789_p8 }
 0x28e   : > { %1677 = dma.done.wait (!%p1534_p3), %s1167_s24, 2048  }
 0x28f   : > { %1679 = vsyncadd (!%p1534_p3), %s1167_s24, 4294965248  ;;  %s18_s23 = sadd.s32 1, %s1702_s23   ;;  %s2080_s18 = smov %s1686_s19 }
 0x290   : > { %p15_p5 = scmp.ge.s32.totalorder %s18_s23, 4   ;;  %s2081_s19 = smov %s1690_s20 }
 0x291   : > { %s2082_s20 = smov %s1795_s6  ;;  %s2083_s21 = smov %s1698_s22 }
 0x292   : > { %s2084_s22 = smov %s2086_s26  ;;  %17 = sbr.rel (!%p15_p5) target bundleno = 4 (0x4), region = 80 }
 0x299   :  { %1172 = vsyncpa [#allocation3], 1 }
 0x29a   :  { %1174 = vsyncpa [#allocation3 + $0x1], 1 }

</bundles_post_ra>
